<compile_context>
chip_gen: v7x
topology: tpu7x:2x2x1
jax: 0.10.0
libtpu: 0.0.40
codegen_flags: <defaults>
</compile_context>

<pallas_src>
import functools

import jax
import jax.numpy as jnp
from jax.experimental import pallas as pl
from jax.experimental.pallas import tpu as pltpu


# ----------------------------- kernel ---------------------------------------


def _bert_ada_self_output_kernel(x_ref, inp_ref, w_ref, b_ref, gamma_ref, beta_ref,
                                 o_ref, *, eps):
    # x_ref:   (TM, H)  tile of hidden_states (native dtype -> MXU-native matmul)
    # inp_ref: (TM, H)  tile of input_tensor (residual)
    # w_ref:   (H, H)   folded dense + LiST weight (same dtype as x)
    # b_ref:   (1, H)   folded bias (f32)
    # gamma_ref/beta_ref: (1, H) LayerNorm affine params (f32)
    # Single MXU pass; accumulate in f32, do all post-matmul math in f32.
    y = jnp.dot(x_ref[...], w_ref[...], preferred_element_type=jnp.float32)
    y = y + b_ref[...]

    # dropout is identity in eval mode; residual add + LayerNorm over the lane axis.
    z = y + inp_ref[...].astype(jnp.float32)
    mean = jnp.mean(z, axis=-1, keepdims=True)
    var = jnp.mean(z * z, axis=-1, keepdims=True) - mean * mean   # single pass
    zn = (z - mean) * jax.lax.rsqrt(var + eps)
    o_ref[...] = (zn * gamma_ref[...] + beta_ref[...]).astype(o_ref.dtype)


# ----------------------------- wrapper ---------------------------------------


def _tpu_vmem_capacity_bytes():
    try:
        return int(pltpu.get_tpu_info().vmem_capacity_bytes)
    except Exception:
        return 64 * 1024 * 1024   # conservative (v7x per-core VMEM)


def _default_tile_m(vmem_capacity_bytes):
    # v7x (64 MiB VMEM/core): 256-row tiles; v5e/v6e (128 MiB): 512-row tiles.
    # Both are multiples of 256 (v6e/v7x MXU rows) and 128 (v5e MXU rows) and of 16 (bf16 sublanes).
    return 256 if vmem_capacity_bytes <= 64 * 1024 * 1024 else 512


def bert_ada_self_output(hidden_states, input_tensor, params, *, eps=1e-12, tile_m=None):
    """hidden_states, input_tensor: [B, S, H].  Returns [B, S, H]."""
    B, S, H = hidden_states.shape
    M = B * S
    dtype = hidden_states.dtype

    # ---- one-time weight prep (wrapper side): fold the LiST adapter into the dense layer ----
    #   y_ada = (x @ Wd^T + bd) @ (I + W1^T @ W2^T) = x @ W_eff + b_eff
    w1_t = params["adapter_w1"].T.astype(jnp.float32)            # (H, A)
    w2_t = params["adapter_w2"].T.astype(jnp.float32)            # (A, H)
    proj = jnp.eye(H, dtype=jnp.float32) + w1_t @ w2_t           # (H, H)
    w_eff = (params["dense_w"].T.astype(jnp.float32) @ proj).astype(dtype)           # (H, H)
    b_eff = params["dense_b"].reshape(1, H).astype(jnp.float32) @ proj               # (1, H) f32
    gamma = params["ln_gamma"].reshape(1, H).astype(jnp.float32)
    beta = params["ln_beta"].reshape(1, H).astype(jnp.float32)

    # ---- tile selection (generation aware) + row padding instead of an assert ----
    vmem_cap = _tpu_vmem_capacity_bytes()
    if tile_m is None:
        tile_m = _default_tile_m(vmem_cap)
    row_align = 16                                   # satisfies f32 (8) and bf16 (16) sublane tiling
    tile_m = max(row_align, (tile_m // row_align) * row_align)
    m_min = ((M + row_align - 1) // row_align) * row_align
    tile_m = min(tile_m, m_min)                      # don't exceed the (padded) problem size
    m_pad = ((M + tile_m - 1) // tile_m) * tile_m

    x2 = hidden_states.reshape(M, H)
    inp2 = input_tensor.reshape(M, H)
    if m_pad != M:
        x2 = jnp.pad(x2, ((0, m_pad - M), (0, 0)))
        inp2 = jnp.pad(inp2, ((0, m_pad - M), (0, 0)))

    # ---- explicit VMEM budget (double-buffered tiles + weight + f32 intermediates) ----
    itemsize = jnp.dtype(dtype).itemsize
    needed = (2 * 3 * tile_m * H * itemsize          # double-buffered x / input / output tiles
              + 2 * H * H * itemsize                 # double-buffered folded weight
              + 8 * tile_m * H * 4                   # f32 intermediates + headroom
              + (1 << 20))
    vmem_limit = int(min(max(needed, 32 * 1024 * 1024), int(0.75 * vmem_cap)))

    kernel = functools.partial(_bert_ada_self_output_kernel, eps=eps)

    out2 = pl.pallas_call(
        kernel,
        out_shape=jax.ShapeDtypeStruct((m_pad, H), dtype),
        grid_spec=pltpu.PrefetchScalarGridSpec(
            num_scalar_prefetch=0,
            grid=(m_pad // tile_m,),
            in_specs=[
                pl.BlockSpec((tile_m, H), lambda i: (i, 0)),   # hidden_states tile
                pl.BlockSpec((tile_m, H), lambda i: (i, 0)),   # input_tensor tile
                pl.BlockSpec((H, H), lambda i: (0, 0)),        # folded dense+adapter weight
                pl.BlockSpec((1, H), lambda i: (0, 0)),        # folded bias (f32)
                pl.BlockSpec((1, H), lambda i: (0, 0)),        # LN gamma (f32)
                pl.BlockSpec((1, H), lambda i: (0, 0)),        # LN beta (f32)
            ],
            out_specs=pl.BlockSpec((tile_m, H), lambda i: (i, 0)),
        ),
        compiler_params=pltpu.CompilerParams(
            dimension_semantics=("parallel",),
            vmem_limit_bytes=vmem_limit,
        ),
    )(x2, inp2, w_eff, b_eff, gamma, beta)

    if m_pad != M:
        out2 = out2[:M]
    return out2.reshape(B, S, H)


# ----------------------------- params / reference ----------------------------


def init_params(key, hidden_size, adapter_dim):
    k = jax.random.split(key, 4)
    # nn.Linear(H, H): weight (H, H), bias (H,)
    dense_w = jax.random.normal(k[0], (hidden_size, hidden_size), jnp.float32) * 0.02
    dense_b = jax.random.normal(k[1], (hidden_size,), jnp.float32) * 0.02
    # adapter_proj_1: Linear(H, A, bias=False) -> weight (A, H), std=0.02
    adapter_w1 = jax.random.normal(k[2], (adapter_dim, hidden_size), jnp.float32) * 0.02
    # adapter_proj_2: Linear(A, H, bias=False) -> weight (H, A), std=0.02
    adapter_w2 = jax.random.normal(k[3], (hidden_size, adapter_dim), jnp.float32) * 0.02
    ln_gamma = jnp.ones((hidden_size,), jnp.float32)
    ln_beta = jnp.zeros((hidden_size,), jnp.float32)
    return dict(dense_w=dense_w, dense_b=dense_b,
                adapter_w1=adapter_w1, adapter_w2=adapter_w2,
                ln_gamma=ln_gamma, ln_beta=ln_beta)


def _reference(hidden_states, input_tensor, params, eps=1e-12):
    # pure-JAX reference of the *unfolded* PyTorch math (LiST adapter, eval-mode dropout)
    y = hidden_states @ params["dense_w"].T + params["dense_b"]
    a = y @ params["adapter_w1"].T
    a = a @ params["adapter_w2"].T
    y = a + y
    z = y + input_tensor
    mean = jnp.mean(z, axis=-1, keepdims=True)
    var = jnp.mean((z - mean) ** 2, axis=-1, keepdims=True)
    zn = (z - mean) / jnp.sqrt(var + eps)
    return zn * params["ln_gamma"] + params["ln_beta"]


if __name__ == "__main__":
    # config: hidden_size=32, adapter_dim=16, adapter_choice='LiST',
    #         layer_norm_eps=1e-12, hidden_dropout_prob (eval -> identity)
    # NOTE: demo shapes are intentionally tiny; tune/benchmark with production BERT shapes
    #       (H=768/1024, A=64/128, B*S >= 4096) where the lane axis is a multiple of 128.
    B, S, H, A = 2, 8, 32, 16
    key = jax.random.PRNGKey(0)
    kp, kx, ki = jax.random.split(key, 3)

    params = init_params(kp, H, A)
    hidden_states = jax.random.normal(kx, (B, S, H), jnp.float32)
    input_tensor = jax.random.normal(ki, (B, S, H), jnp.float32)

    out = bert_ada_self_output(hidden_states, input_tensor, params, eps=1e-12)
    out = jax.block_until_ready(out)

    ref = _reference(hidden_states, input_tensor, params, eps=1e-12)
    assert out.shape == (B, S, H)
    assert jnp.allclose(out, ref, atol=1e-5, rtol=1e-5), "mismatch vs reference"

    print("KERNEL_OK")
</pallas_src>

<mosaic_0001>
module attributes {stable_mosaic.version = 11 : i64} {
  func.func @_bert_ada_self_output_kernel(%arg0: i32, %arg1: memref<16x32xf32, #tpu.memory_space<vmem>>, %arg2: memref<16x32xf32, #tpu.memory_space<vmem>>, %arg3: memref<32x32xf32, #tpu.memory_space<vmem>>, %arg4: memref<1x32xf32, #tpu.memory_space<vmem>>, %arg5: memref<1x32xf32, #tpu.memory_space<vmem>>, %arg6: memref<1x32xf32, #tpu.memory_space<vmem>>, %arg7: memref<16x32xf32, #tpu.memory_space<vmem>>) attributes {dimension_semantics = [#tpu.dimension_semantics<parallel>], iteration_bounds = array<i64: 1>, scalar_prefetch = 0 : i64, scratch_operands = 0 : i64, tpu.core_type = #tpu.core_type<tc>, window_params = [{transform_indices = @transform_0, window_bounds = array<i64: 16, 32>}, {transform_indices = @transform_1, window_bounds = array<i64: 16, 32>}, {pipeline_mode = #tpu.pipeline_mode<synchronous>, transform_indices = @transform_2, window_bounds = array<i64: 32, 32>}, {pipeline_mode = #tpu.pipeline_mode<synchronous>, transform_indices = @transform_3, window_bounds = array<i64: 1, 32>}, {pipeline_mode = #tpu.pipeline_mode<synchronous>, transform_indices = @transform_4, window_bounds = array<i64: 1, 32>}, {pipeline_mode = #tpu.pipeline_mode<synchronous>, transform_indices = @transform_5, window_bounds = array<i64: 1, 32>}, {transform_indices = @transform_6, window_bounds = array<i64: 16, 32>}]} {
    %c0 = arith.constant 0 : index
    %c0_0 = arith.constant 0 : index
    %0 = vector.load %arg1[%c0, %c0_0] : memref<16x32xf32, #tpu.memory_space<vmem>>, vector<16x32xf32>
    %c0_1 = arith.constant 0 : index
    %c0_2 = arith.constant 0 : index
    %1 = vector.load %arg3[%c0_1, %c0_2] : memref<32x32xf32, #tpu.memory_space<vmem>>, vector<32x32xf32>
    %cst = arith.constant dense<0.000000e+00> : vector<16x32xf32>
    %2 = tpu.matmul %0, %1, %cst {dimension_numbers = #tpu.dot_dimension_numbers<[1], [0], [0], [1], [0, 0, 1, 1], [], []>} : vector<16x32xf32>, vector<32x32xf32>, vector<16x32xf32> -> vector<16x32xf32>
    %c0_3 = arith.constant 0 : index
    %c0_4 = arith.constant 0 : index
    %3 = vector.load %arg4[%c0_3, %c0_4] : memref<1x32xf32, #tpu.memory_space<vmem>>, vector<1x32xf32>
    %4 = vector.broadcast %3 : vector<1x32xf32> to vector<16x32xf32>
    %5 = arith.addf %2, %4 : vector<16x32xf32>
    %c0_5 = arith.constant 0 : index
    %c0_6 = arith.constant 0 : index
    %6 = vector.load %arg2[%c0_5, %c0_6] : memref<16x32xf32, #tpu.memory_space<vmem>>, vector<16x32xf32>
    %7 = arith.addf %5, %6 : vector<16x32xf32>
    %cst_7 = arith.constant dense<0.000000e+00> : vector<16xf32>
    %8 = vector.multi_reduction <add>, %7, %cst_7 [1] : vector<16x32xf32> to vector<16xf32>
    %9 = vector.shape_cast %8 : vector<16xf32> to vector<16x1xf32>
    %cst_8 = arith.constant 3.200000e+01 : f32
    %10 = vector.broadcast %cst_8 : f32 to vector<16x1xf32>
    %11 = arith.divf %9, %10 : vector<16x1xf32>
    %12 = arith.mulf %7, %7 : vector<16x32xf32>
    %cst_9 = arith.constant dense<0.000000e+00> : vector<16xf32>
    %13 = vector.multi_reduction <add>, %12, %cst_9 [1] : vector<16x32xf32> to vector<16xf32>
    %14 = vector.shape_cast %13 : vector<16xf32> to vector<16x1xf32>
    %cst_10 = arith.constant 3.200000e+01 : f32
    %15 = vector.broadcast %cst_10 : f32 to vector<16x1xf32>
    %16 = arith.divf %14, %15 : vector<16x1xf32>
    %17 = arith.mulf %11, %11 : vector<16x1xf32>
    %18 = arith.subf %16, %17 : vector<16x1xf32>
    %19 = vector.broadcast %11 : vector<16x1xf32> to vector<16x32xf32>
    %20 = arith.subf %7, %19 : vector<16x32xf32>
    %cst_11 = arith.constant 9.99999996E-13 : f32
    %21 = vector.broadcast %cst_11 : f32 to vector<16x1xf32>
    %22 = arith.addf %18, %21 : vector<16x1xf32>
    %23 = math.rsqrt %22 : vector<16x1xf32>
    %24 = vector.broadcast %23 : vector<16x1xf32> to vector<16x32xf32>
    %25 = arith.mulf %20, %24 : vector<16x32xf32>
    %c0_12 = arith.constant 0 : index
    %c0_13 = arith.constant 0 : index
    %26 = vector.load %arg5[%c0_12, %c0_13] : memref<1x32xf32, #tpu.memory_space<vmem>>, vector<1x32xf32>
    %27 = vector.broadcast %26 : vector<1x32xf32> to vector<16x32xf32>
    %28 = arith.mulf %25, %27 : vector<16x32xf32>
    %c0_14 = arith.constant 0 : index
    %c0_15 = arith.constant 0 : index
    %29 = vector.load %arg6[%c0_14, %c0_15] : memref<1x32xf32, #tpu.memory_space<vmem>>, vector<1x32xf32>
    %30 = vector.broadcast %29 : vector<1x32xf32> to vector<16x32xf32>
    %31 = arith.addf %28, %30 : vector<16x32xf32>
    %c0_16 = arith.constant 0 : index
    %c0_17 = arith.constant 0 : index
    %32 = vector.load %arg7[%c0_16, %c0_17] : memref<16x32xf32, #tpu.memory_space<vmem>>, vector<16x32xf32>
    tpu.vector_store %arg7[%c0_16, %c0_17], %31 {strides = array<i32>} : memref<16x32xf32, #tpu.memory_space<vmem>>, vector<16x32xf32>,
    return
  }
  func.func @transform_0(%arg0: i32) -> (i32, i32) {
    %c0_i32 = arith.constant 0 : i32
    %c0_i32_0 = arith.constant 0 : i32
    return %arg0, %c0_i32 : i32, i32
  }
  func.func @transform_1(%arg0: i32) -> (i32, i32) {
    %c0_i32 = arith.constant 0 : i32
    %c0_i32_0 = arith.constant 0 : i32
    return %arg0, %c0_i32 : i32, i32
  }
  func.func @transform_2(%arg0: i32) -> (i32, i32) {
    %c0_i32 = arith.constant 0 : i32
    %c0_i32_0 = arith.constant 0 : i32
    %c0_i32_1 = arith.constant 0 : i32
    return %c0_i32, %c0_i32_0 : i32, i32
  }
  func.func @transform_3(%arg0: i32) -> (i32, i32) {
    %c0_i32 = arith.constant 0 : i32
    %c0_i32_0 = arith.constant 0 : i32
    %c0_i32_1 = arith.constant 0 : i32
    return %c0_i32, %c0_i32_0 : i32, i32
  }
  func.func @transform_4(%arg0: i32) -> (i32, i32) {
    %c0_i32 = arith.constant 0 : i32
    %c0_i32_0 = arith.constant 0 : i32
    %c0_i32_1 = arith.constant 0 : i32
    return %c0_i32, %c0_i32_0 : i32, i32
  }
  func.func @transform_5(%arg0: i32) -> (i32, i32) {
    %c0_i32 = arith.constant 0 : i32
    %c0_i32_0 = arith.constant 0 : i32
    %c0_i32_1 = arith.constant 0 : i32
    return %c0_i32, %c0_i32_0 : i32, i32
  }
  func.func @transform_6(%arg0: i32) -> (i32, i32) {
    %c0_i32 = arith.constant 0 : i32
    %c0_i32_0 = arith.constant 0 : i32
    return %arg0, %c0_i32 : i32, i32
  }
}

</mosaic_0001>

<bundles_post_ra>
// kernel: tpu_custom_call.1
= control target key start
LH: loop header
LB: loop body
LE: loop exit
PB: predicated region body
PF: predicated region fallthrough
CT: control target
= control target key end

     0   :  { %11 = vsyncpa [#allocation3], 0  ;;  %s492_s0 = inlined_call_operand.hbm [shape: f32[16,32], index: 0, kind: input, shape index: {}]   ;;  %s493_s1 = inlined_call_operand.hbm [shape: f32[16,32], index: 1, kind: input, shape index: {}]   ;;  %s494_s2 = inlined_call_operand.hbm [shape: f32[32,32], index: 2, kind: input, shape index: {}]   ;;  %s495_s3 = inlined_call_operand.vmem [shape: f32[1,32], index: 3, kind: input, shape index: {}]   ;;  %s496_s4 = inlined_call_operand.vmem [shape: f32[1,32], index: 4, kind: input, shape index: {}]   ;;  %s497_s5 = inlined_call_operand.vmem [shape: f32[1,32], index: 5, kind: input, shape index: {}]   ;;  %s498_s6 = inlined_call_operand.hbm [shape: f32[16,32], index: 6, kind: output, shape index: {}]  }
   0x1   :  { %12 = vsyncpa [#allocation6], 0 }
   0x2   :  { %13 = vsyncpa [#allocation4], 0  ;;  %s367_s21 = smov [#allocation5]   ;;  %s368_s23 = smov [#allocation2]  }
   0x3   :  { %s31_s22 = sshll.u32 %s367_s21, 4  ;;  %s19_s24 = sshll.u32 %s368_s23, 4  ;;  %s32_s22 = int_to_ptr.vmem [resolvable:$true] %s31_s22  ;;  %s408_s24 = int_to_ptr.vmem [resolvable:$true] %s19_s24 }
   0x4   :  { %s273_s27 = scalar_lea.hbm %s493_s1, 256 }
   0x5   :  { %p274_p0 = scmp.ne.s32.totalorder %s493_s1, %s273_s27  ;;  %p277_p1 = scmp.lt.u32.totalorder %s273_s27, %s493_s1 }
   0x7   :  { %p279_p2 = pnand %p277_p1, %p274_p0 }
   0x9   :  { %282 = shalt.err (!%p279_p2)
}
   0xa   :  { %s283_s8 = scalar_lea.vmem %s32_s22, 256  ;;  %p288_p4 = scmp.lt.s32.totalorder %s32_s22, %s32_s22 }
   0xb   :  { %p284_p3 = scmp.ne.s32.totalorder %s32_s22, %s283_s8  ;;  %p289_p5 = scmp.lt.s32.totalorder %s283_s8, %s283_s8 }
   0xd   :  { %p290_p6 = por %p289_p5, %p288_p4 }
   0xf   :  { %p291_p7 = pnand %p290_p6, %p284_p3 }
  0x11   :  { %294 = shalt.err (!%p291_p7)
}
  0x12   :  { %s369_s9 = smov 128   ;;  %s370_s10 = smov 8  }
  0x13   :  { %37 = dma.hbm_to_vmem [thread:$0]  %s493_s1, 256, %s32_s22, [#allocation6], %s369_s9, %s369_s9, %s370_s10  }
  0x14   :  { %s295_s15 = scalar_lea.hbm %s492_s0, 256 }
  0x15   :  { %p296_p8 = scmp.ne.s32.totalorder %s492_s0, %s295_s15  ;;  %p299_p9 = scmp.lt.u32.totalorder %s295_s15, %s492_s0 }
  0x17   :  { %p301_p10 = pnand %p299_p9, %p296_p8 }
  0x19   :  { %304 = shalt.err (!%p301_p10)
}
  0x1a   :  { %s305_s20 = scalar_lea.vmem %s408_s24, 256  ;;  %p310_p12 = scmp.lt.s32.totalorder %s408_s24, %s408_s24 }
  0x1b   :  { %p306_p11 = scmp.ne.s32.totalorder %s408_s24, %s305_s20  ;;  %p311_p13 = scmp.lt.s32.totalorder %s305_s20, %s305_s20 }
  0x1d   :  { %p312_p0 = por %p311_p13, %p310_p12 }
  0x1f   :  { %p313_p1 = pnand %p312_p0, %p306_p11 }
  0x21   :  { %316 = shalt.err (!%p313_p1)
}
  0x22   :  { %25 = dma.hbm_to_vmem [thread:$0]  %s492_s0, 256, %s408_s24, [#allocation3], %s369_s9, %s369_s9, %s370_s10  }
  0x23   :  { %s371_s22 = smov [#allocation7]   ;;  %s317_s27 = scalar_lea.hbm %s494_s2, 512 }
  0x24   :  { %s43_s23 = sshll.u32 %s371_s22, 4  ;;  %p318_p2 = scmp.ne.s32.totalorder %s494_s2, %s317_s27  ;;  %s44_s23 = int_to_ptr.vmem [resolvable:$true] %s43_s23 }
  0x25   :  { %p321_p3 = scmp.lt.u32.totalorder %s317_s27, %s494_s2 }
  0x27   :  { %p323_p4 = pnand %p321_p3, %p318_p2 }
  0x29   :  { %326 = shalt.err (!%p323_p4)
}
  0x2a   :  { %s327_s8 = scalar_lea.vmem %s44_s23, 512  ;;  %p332_p6 = scmp.lt.s32.totalorder %s44_s23, %s44_s23 }
  0x2b   :  { %p328_p5 = scmp.ne.s32.totalorder %s44_s23, %s327_s8  ;;  %p333_p7 = scmp.lt.s32.totalorder %s327_s8, %s327_s8 }
  0x2d   :  { %p334_p8 = por %p333_p7, %p332_p6 }
  0x2f   :  { %p335_p9 = pnand %p334_p8, %p328_p5 }
  0x31   :  { %338 = shalt.err (!%p335_p9)
}
  0x32   :  { %49 = dma.hbm_to_vmem [thread:$0]  %s494_s2, 512, %s44_s23, [#allocation6], %s369_s9, %s369_s9, %s370_s10  }
  0x33   :  { %361 = dma.done.wait [#allocation3], 256  }
  0x34   :  { %362 = vsyncadd [#allocation3], 4294967040 }
  0x35   :  { %363 = dma.done.wait [#allocation6], 768  }
  0x36   :  { %364 = vsyncadd [#allocation6], 4294966528  ;;  %vm78_vm0 = vcmask 261120   ;;  %v67_v0 = vld [vmem:[#allocation7] sm:$0xff]  ;;  %v68_v1 = vld [vmem:[#allocation7 + $0x8] sm:$0xff]  ;;  %s372_s15 = smov [#allocation8]  }
  0x37   :  { %v69_v2 = vld [vmem:[#allocation7 + $0x10] sm:$0xff]  ;;  %v255_v3 = vpack.c.bf16 %v68_v1, %v67_v0  ;;  %v70_v4 = vld [vmem:[#allocation7 + $0x18] sm:$0xff]  ;;  %v65_v5 = vld [vmem:[#allocation2] sm:$0xff]  ;;  %s220_s16 = sshll.u32 %s372_s15, 4  ;;  %s221_s16 = int_to_ptr.vmem [resolvable:$true] %s220_s16 }
  0x38   :  { %v259_v6 = vpack.c.bf16 %v70_v4, %v69_v2  ;;  %252 = vmatprep.mubr.msk.f32.mxu0 %vm78_vm0, %v65_v5  ;;  %v66_v7 = vld [vmem:[#allocation2 + $0x8] sm:$0xff]  ;;  %v233_v8 = vld [vmem:[%s495_s3] ss:$0 sm:$0xff]  ;;  %v161_v11 = vld [vmem:[#allocation5 + $0x8] sm:$0xff]  ;;  %p344_p11 = scmp.lt.s32.totalorder %s221_s16, %s221_s16 }
  0x39   :  { %256 = vmatprep.subr.bf16.mxu0 %v255_v3  ;;  %v160_v13 = vld [vmem:[#allocation5] sm:$0xff]  ;;  %v236_v39 = vld [vmem:[%s496_s4] ss:$0 sm:$0xff]  ;;  %s339_s4 = scalar_lea.vmem %s221_s16, 256 }
  0x3a   :  { %258 = vmatpush3.bf16.msra.mxu0 %v255_v3  ;;  %v237_v41 = vld [vmem:[%s497_s5] ss:$0 sm:$0xff]  ;;  %p340_p10 = scmp.ne.s32.totalorder %s221_s16, %s339_s4  ;;  %p345_p12 = scmp.lt.s32.totalorder %s339_s4, %s339_s4 }
  0x3b   :  { %260 = vmatprep.subr.bf16.mxu0 %v259_v6 }
  0x3c   :  { %p346_p13 = por %p345_p12, %p344_p11 }
  0x3e   :  { %262 = vmatpush3.bf16.msra.mxu0 %v259_v6  ;;  %p347_p0 = pnand %p346_p13, %p340_p10 }
  0x41   :  { %253 = vmatmul.mubr.msk.f32.vlgmr.msra.gmra.mrb[0].mxu0 %vm78_vm0, %v66_v7 }
 0x114   :  { %v254_v9 = vpop.f32.mrb[0].mxu0 }
 0x115   :  { %v157_v10 = vadd.f32 %v254_v9, %v233_v8  ;;  %v151_v12 = vpop.f32.mrb[1].mxu0 }
 0x116   :  { %v152_v14 = vadd.f32 %v233_v8, %v151_v12 }
 0x117   :  { %v163_v15 = vadd.f32 %v161_v11, %v157_v10 }
 0x118   :  { %v162_v16 = vadd.f32 %v160_v13, %v152_v14 }
 0x119   :  { %v174_v20 = vmul.f32 %v163_v15, %v163_v15  ;;  %v167_v21 = vsel %vm78_vm0, %v163_v15, 0.0 }
 0x11a   :  { %v164_v17 = vsel %vm78_vm0, %v162_v16, 0.0  ;;  %v173_v18 = vmul.f32 %v162_v16, %v162_v16 }
 0x11b   :  { %165 = vadd.xlane.f32.xlu0 %v164_v17  ;;  %v178_v22 = vsel %vm78_vm0, %v174_v20, 0.0 }
 0x11c   :  { %v175_v19 = vsel %vm78_vm0, %v173_v18, 0.0 }
 0x11d   :  { %176 = vadd.xlane.f32.xlu1 %v175_v19 }
 0x11f   :  { %168 = vadd.xlane.f32.xlu0 %v167_v21 }
 0x121   :  { %179 = vadd.xlane.f32.xlu1 %v178_v22 }
 0x1a8   :  { %v166_v23 = vpop.xlane.xlu0 %165 }
 0x1a9   :  { %v171_v24 = vmul.f32 0.03125, %v166_v23 }
 0x1aa   :  { %v177_v25 = vpop.xlane.xlu1 %176 }
 0x1ab   :  { %v183_v26 = vmul.f32 %v171_v24, %v171_v24  ;;  %v181_v27 = vmul.f32 0.03125, %v177_v25  ;;  %v187_v37 = vsub.f32 %v162_v16, %v171_v24 }
 0x1ac   :  { %v169_v28 = vpop.xlane.xlu0 %168 }
 0x1ad   :  { %v185_v29 = vsub.f32 %v181_v27, %v183_v26  ;;  %v172_v30 = vmul.f32 0.03125, %v169_v28 }
 0x1ae   :  { %v180_v31 = vpop.xlane.xlu1 %179 }
 0x1af   :  { %v189_v32 = vadd.f32 1e-12, %v185_v29  ;;  %v184_v33 = vmul.f32 %v172_v30, %v172_v30  ;;  %v182_v34 = vmul.f32 0.03125, %v180_v31  ;;  %v188_v42 = vsub.f32 %v163_v15, %v172_v30 }
 0x1b1   :  { %269 = vrsqrt.f32 %v189_v32  ;;  %v186_v35 = vsub.f32 %v182_v34, %v184_v33 }
 0x1b3   :  { %v190_v36 = vadd.f32 1e-12, %v186_v35 }
 0x1b5   :  { %271 = vrsqrt.f32 %v190_v36 }
 0x1bb   :  { %v270_v38 = vpop.eup %269 }
 0x1bc   :  { %v193_v40 = vmul.f32 %v270_v38, %v187_v37 }
 0x1be   :  { %v202_v43 = vmul.f32 %v236_v39, %v193_v40 }
 0x1bf   :  { %v272_v44 = vpop.eup %271 }
 0x1c0   :  { %v194_v45 = vmul.f32 %v272_v44, %v188_v42  ;;  %v211_v46 = vadd.f32 %v237_v41, %v202_v43 }
 0x1c2   :  { %v203_v47 = vmul.f32 %v236_v39, %v194_v45  ;;  %213 = vst.msk [vmem:[#allocation8] sm:$0xff] %vm78_vm0, %v211_v46 }
 0x1c4   :  { %v212_v48 = vadd.f32 %v237_v41, %v203_v47 }
 0x1c6   :  { %214 = vst.msk [vmem:[#allocation8 + $0x8] sm:$0xff] %vm78_vm0, %v212_v48 }
 0x1c7   :  { %350 = shalt.err (!%p347_p0)
}
 0x1c8   :  { %s351_s18 = scalar_lea.hbm %s498_s6, 256 }
 0x1c9   :  { %p352_p1 = scmp.ne.s32.totalorder %s498_s6, %s351_s18  ;;  %p355_p2 = scmp.lt.u32.totalorder %s351_s18, %s498_s6 }
 0x1cb   :  { %p357_p3 = pnand %p355_p2, %p352_p1 }
 0x1cd   :  { %360 = shalt.err (!%p357_p3)
}
 0x1ce   :  { %226 = dma.vmem_to_hbm [thread:$0]  %s221_s16, 256, %s498_s6, [#allocation4], %s369_s9, %s369_s9, %s370_s10  }
 0x1cf   :  { %365 = dma.done.wait [#allocation4], 256  }
 0x1d0   :  { %366 = vsyncadd [#allocation4], 4294967040 }
 0x1d1   :  { %230 = vsyncpa [#allocation3], 1 }
 0x1d2   :  { %231 = vsyncpa [#allocation6], 1 }
 0x1d3   :  { %232 = vsyncpa [#allocation4], 1 }

</bundles_post_ra>
